<compile_context>
chip_gen: v6e
topology: v6e:2x2x1
jax: 0.10.0
libtpu: 0.0.40
codegen_flags: <defaults>
</compile_context>

<pallas_src>
import functools

import jax
import jax.numpy as jnp
from jax.experimental import pallas as pl
from jax.experimental.pallas import tpu as pltpu

EPS = 1e-5
LANES = 128


def _round_up(x, m):
    return (x + m - 1) // m * m


def mmd_resnet_kernel(x_ref, w_ref, gb_ref, a_ref, o_ref, *, n_total, groups, feat):
    """Whole forward pass, batch resident in VMEM.

    x_ref  : [Np, L]              lane-packed input (L = groups*feat, Np = N/groups)
    w_ref  : [n_blocks, 2, L, L]  block-diagonal (in,out) Linear weights, bf16
    gb_ref : [n_blocks*2*2, L]    rows 2*idx = gamma, 2*idx+1 = beta (idx=blk*2+layer), f32
    a_ref  : [n_blocks*2] (SMEM)  PReLU scalar slopes
    o_ref  : [Np, L]              lane-packed output
    """
    h = x_ref[...].astype(jnp.float32)
    n_blocks = w_ref.shape[0]
    inv_n = jnp.float32(1.0 / n_total)

    for blk in range(n_blocks):                # small & static -> fully unrolled
        y = h
        for layer in range(2):
            idx = blk * 2 + layer
            wt = w_ref[blk, layer]             # [L, L] bf16 (in, out), block-diag
            gvec = gb_ref[2 * idx:2 * idx + 1, :]        # gamma, [1, L]
            betav = gb_ref[2 * idx + 1:2 * idx + 2, :]   # beta,  [1, L]
            a = a_ref[idx]                               # scalar slope (SMEM)

            # Linear on the MXU (bf16 operands, f32 accumulation).  The Linear
            # bias is dropped: it is exactly cancelled by the training-mode
            # BatchNorm below (shifts z and its batch mean identically).
            z = jnp.dot(y.astype(jnp.bfloat16), wt,
                        preferred_element_type=jnp.float32)           # [Np, L] f32

            # BatchNorm1d (training mode): sum / sum-of-squares in one stats
            # phase (both reductions read the same z block; Mosaic fuses the
            # loads), folded into a single scale/shift.
            s = jnp.concatenate(
                [jnp.sum(z, axis=0, keepdims=True),
                 jnp.sum(z * z, axis=0, keepdims=True)], axis=0)      # [2, L]
            # Butterfly-fold the partial sums across the `groups` replicated
            # lane groups so every lane holds full-batch statistics.
            g_rem = groups
            while g_rem > 1:
                half = g_rem // 2
                s = s + pltpu.roll(s, shift=half * feat, axis=1)      # lane axis
                g_rem = half
            mean = s[0:1, :] * inv_n
            var = jnp.maximum(s[1:2, :] * inv_n - mean * mean, 0.0)   # biased var
            scale = gvec * jax.lax.rsqrt(var + EPS)
            shift = betav - mean * scale

            # Fused BN-apply + PReLU: single elementwise pass, zn never stored.
            t = z * scale + shift
            y = jnp.maximum(t, 0.0) + a * jnp.minimum(t, 0.0)
        h = h + y                               # ResnetBlock skip connection

    # Outer Mmd_resnet skip: re-read x (not kept live across the network).
    o_ref[...] = (x_ref[...].astype(jnp.float32) + h).astype(o_ref.dtype)


def pack_mmd_resnet_params(w, gamma, beta, a, *, batch, feat_dim):
    """One-time parameter packing (do NOT call per forward).

    w: [n_blocks, 2, D, D] PyTorch (out,in) Linear weights.
    gamma, beta: [n_blocks, 2, D] BatchNorm1d affine params.
    a: [n_blocks, 2] PReLU scalar slopes.
    """
    n_blocks = w.shape[0]
    D, N = feat_dim, batch

    # Lane-dense packing: pad D to a power-of-two divisor of 128 and pack
    # `groups` samples into the 128 lanes; otherwise pad D to a multiple of 128
    # (lane-dense store either way -> no masked vst).
    if D <= LANES:
        Dp = 1
        while Dp < D:
            Dp *= 2
        groups = LANES // Dp
        if groups < 1 or N % groups != 0:
            groups, Dp = 1, _round_up(D, LANES)
    else:
        groups, Dp = 1, _round_up(D, LANES)
    L = groups * Dp

    # PyTorch stores W as (out,in) and computes x @ W.T -> pre-transpose to
    # (in,out), zero-pad features, replicate block-diagonally across lane groups.
    wt = jnp.swapaxes(w, -1, -2)                                      # [B,2,D,D]
    wt = jnp.pad(wt, ((0, 0), (0, 0), (0, Dp - D), (0, Dp - D)))
    eye = jnp.eye(groups, dtype=wt.dtype)
    wp = jnp.einsum('blij,gh->blgihj', wt, eye).reshape(n_blocks, 2, L, L)
    wp = wp.astype(jnp.bfloat16)

    def tile_vec(v):                                                  # [B,2,D] -> [B,2,L]
        vp = jnp.pad(v, ((0, 0), (0, 0), (0, Dp - D))).astype(jnp.float32)
        return jnp.tile(vp, (1, 1, groups))

    # Single sublane-dense gamma/beta slab: rows 2*idx (gamma), 2*idx+1 (beta).
    gb = jnp.stack([tile_vec(gamma), tile_vec(beta)], axis=2)         # [B,2,2,L]
    gb = gb.reshape(n_blocks * 2 * 2, L)

    a_flat = a.reshape(-1).astype(jnp.float32)      # 1-D SMEM, avoids [8,128] pad

    meta = dict(groups=groups, feat=Dp, lanes=L, n=N, d=D, n_blocks=n_blocks)
    return dict(w=wp, gb=gb, a=a_flat, meta=meta)


def mmd_resnet_forward(x, params):
    """x: [N, D] f32. params: output of pack_mmd_resnet_params."""
    meta = params['meta']
    N, D = x.shape
    assert N == meta['n'] and D == meta['d'], "params were packed for other shapes"
    groups, Dp, L, n_blocks = meta['groups'], meta['feat'], meta['lanes'], meta['n_blocks']
    Np = N // groups

    x_p = jnp.pad(x, ((0, 0), (0, Dp - D))).reshape(Np, L)

    wp, gb, a_flat = params['w'], params['gb'], params['a']

    param_bytes = int(wp.size) * 2 + (int(gb.size) + int(a_flat.size)) * 4
    act_bytes = int(x_p.size) * 4 * 6               # x/h/y/z + temps, headroom
    try:
        phys_vmem = int(pltpu.get_tpu_info().vmem_capacity_bytes)
    except Exception:
        phys_vmem = 64 << 20                        # conservative (v7x per-TC)
    vmem_limit = int(min(max(2 * (param_bytes + act_bytes), 16 << 20),
                         (phys_vmem * 3) // 4))     # 25% headroom for compiler scratch

    cost = pl.CostEstimate(
        flops=2 * n_blocks * 2 * Np * L * L,
        transcendentals=n_blocks * 2 * L,
        bytes_accessed=2 * int(x_p.size) * 4 + param_bytes,
    )

    kernel = functools.partial(mmd_resnet_kernel, n_total=N, groups=groups, feat=Dp)

    out_p = pl.pallas_call(
        kernel,
        out_shape=jax.ShapeDtypeStruct((Np, L), x.dtype),
        in_specs=[
            pl.BlockSpec(memory_space=pltpu.MemorySpace.VMEM),  # x (packed)
            pl.BlockSpec(memory_space=pltpu.MemorySpace.VMEM),  # W (block-diag, bf16)
            pl.BlockSpec(memory_space=pltpu.MemorySpace.VMEM),  # gamma/beta slab
            pl.BlockSpec(memory_space=pltpu.MemorySpace.SMEM),  # PReLU slopes
        ],
        out_specs=pl.BlockSpec(memory_space=pltpu.MemorySpace.VMEM),
        compiler_params=pltpu.CompilerParams(vmem_limit_bytes=vmem_limit),
        cost_estimate=cost,
    )(x_p, wp, gb, a_flat)

    return out_p.reshape(N, Dp)[:, :D]


def reference_forward(x, w, b, gamma, beta, a, *, bf16_matmul=False):
    """Plain-JAX reference mirroring the PyTorch module (training-mode BN,
    Linear bias included — the kernel drops it since BN cancels it exactly)."""
    n_blocks = w.shape[0]
    h = x
    for blk in range(n_blocks):
        y = h
        for layer in range(2):
            if bf16_matmul:
                z = jnp.dot(y.astype(jnp.bfloat16),
                            w[blk, layer].T.astype(jnp.bfloat16),
                            preferred_element_type=jnp.float32) + b[blk, layer]
            else:
                z = y @ w[blk, layer].T + b[blk, layer]
            mean = z.mean(axis=0)
            var = ((z - mean) ** 2).mean(axis=0)
            zn = (z - mean) * jax.lax.rsqrt(var + EPS) * gamma[blk, layer] + beta[blk, layer]
            y = jnp.where(zn >= 0.0, zn, a[blk, layer] * zn)
        h = h + y
    return x + h


if __name__ == "__main__":
    N, D, n_blocks = 8, 32, 3   # batch, PCA feature dim, number of ResnetBlocks

    key = jax.random.PRNGKey(0)
    kx, kw, kb = jax.random.split(key, 3)

    x = jax.random.normal(kx, (N, D), dtype=jnp.float32)

    # Deterministic parameter init (shapes match the PyTorch module; values synthetic).
    w = jax.random.normal(kw, (n_blocks, 2, D, D), dtype=jnp.float32) * (1.0 / (D ** 0.5))
    b = jax.random.normal(kb, (n_blocks, 2, D), dtype=jnp.float32) * 0.1   # cancelled by BN
    gamma = jnp.ones((n_blocks, 2, D), dtype=jnp.float32)    # BatchNorm1d weight init
    beta = jnp.zeros((n_blocks, 2, D), dtype=jnp.float32)    # BatchNorm1d bias init
    a = jnp.full((n_blocks, 2), 0.25, dtype=jnp.float32)     # PReLU default slope

    params = pack_mmd_resnet_params(w, gamma, beta, a, batch=N, feat_dim=D)  # one-time

    out = jax.block_until_ready(mmd_resnet_forward(x, params))
    assert out.shape == (N, D)

    # Matched-numerics reference (bf16 matmul, f32 BN): validates packing /
    # block-diag / lane-fold / folded-BN / bias-cancellation logic.
    ref_bf16 = reference_forward(x, w, b, gamma, beta, a, bf16_matmul=True)
    assert jnp.allclose(out, ref_bf16, atol=1e-2, rtol=1e-2), "mismatch vs bf16-matmul reference"

    # Full-f32 PyTorch-faithful reference: loose tolerance covers bf16 cast error.
    ref_f32 = reference_forward(x, w, b, gamma, beta, a, bf16_matmul=False)
    assert jnp.allclose(out, ref_f32, atol=1e-1, rtol=1e-1), "mismatch vs f32 reference"

    print("KERNEL_OK")
</pallas_src>

<mosaic_0001>
module attributes {stable_mosaic.version = 11 : i64} {
  func.func @mmd_resnet_kernel(%arg0: memref<2x128xf32, #tpu.memory_space<vmem>>, %arg1: memref<3x2x128x128xbf16, #tpu.memory_space<vmem>>, %arg2: memref<12x128xf32, #tpu.memory_space<vmem>>, %arg3: memref<6xf32, #tpu.memory_space<smem>>, %arg4: memref<2x128xf32, #tpu.memory_space<vmem>>) attributes {dimension_semantics = [], scalar_prefetch = 0 : i64, scratch_operands = 0 : i64, tpu.core_type = #tpu.core_type<tc>} {
    %c0 = arith.constant 0 : index
    %c0_0 = arith.constant 0 : index
    %0 = vector.load %arg0[%c0, %c0_0] : memref<2x128xf32, #tpu.memory_space<vmem>>, vector<2x128xf32>
    %c0_1 = arith.constant 0 : index
    %c0_2 = arith.constant 0 : index
    %c0_3 = arith.constant 0 : index
    %c0_4 = arith.constant 0 : index
    %1 = vector.load %arg1[%c0_1, %c0_2, %c0_3, %c0_4] : memref<3x2x128x128xbf16, #tpu.memory_space<vmem>>, vector<1x1x128x128xbf16>
    %2 = vector.shape_cast %1 : vector<1x1x128x128xbf16> to vector<128x128xbf16>
    %c0_5 = arith.constant 0 : index
    %c0_6 = arith.constant 0 : index
    %3 = vector.load %arg2[%c0_5, %c0_6] : memref<12x128xf32, #tpu.memory_space<vmem>>, vector<1x128xf32>
    %c1 = arith.constant 1 : index
    %c0_7 = arith.constant 0 : index
    %4 = vector.load %arg2[%c1, %c0_7] : memref<12x128xf32, #tpu.memory_space<vmem>>, vector<1x128xf32>
    %c0_8 = arith.constant 0 : index
    %5 = memref.load %arg3[%c0_8] : memref<6xf32, #tpu.memory_space<smem>>
    %6 = arith.truncf %0 : vector<2x128xf32> to vector<2x128xbf16>
    %cst = arith.constant dense<0.000000e+00> : vector<2x128xf32>
    %7 = tpu.matmul %6, %2, %cst {dimension_numbers = #tpu.dot_dimension_numbers<[1], [0], [0], [1], [0, 0, 1, 1], [], []>} : vector<2x128xbf16>, vector<128x128xbf16>, vector<2x128xf32> -> vector<2x128xf32>
    %cst_9 = arith.constant dense<0.000000e+00> : vector<128xf32>
    %8 = vector.multi_reduction <add>, %7, %cst_9 [0] : vector<2x128xf32> to vector<128xf32>
    %9 = vector.shape_cast %8 : vector<128xf32> to vector<1x128xf32>
    %10 = arith.mulf %7, %7 : vector<2x128xf32>
    %cst_10 = arith.constant dense<0.000000e+00> : vector<128xf32>
    %11 = vector.multi_reduction <add>, %10, %cst_10 [0] : vector<2x128xf32> to vector<128xf32>
    %12 = vector.shape_cast %11 : vector<128xf32> to vector<1x128xf32>
    %13 = tpu.concatenate %9, %12 in 0 : vector<1x128xf32>, vector<1x128xf32> -> vector<2x128xf32>
    %c64_i32 = arith.constant 64 : i32
    %14 = tpu.dynamic_rotate %13 by %c64_i32 dim 1 : vector<2x128xf32>, i32 -> vector<2x128xf32>
    %15 = arith.addf %13, %14 : vector<2x128xf32>
    %c32_i32 = arith.constant 32 : i32
    %16 = tpu.dynamic_rotate %15 by %c32_i32 dim 1 : vector<2x128xf32>, i32 -> vector<2x128xf32>
    %17 = arith.addf %15, %16 : vector<2x128xf32>
    %18 = vector.extract_strided_slice %17 {offsets = [0, 0], sizes = [1, 128], strides = [1, 1]} : vector<2x128xf32> to vector<1x128xf32>
    %cst_11 = arith.constant 1.250000e-01 : f32
    %19 = vector.broadcast %cst_11 : f32 to vector<1x128xf32>
    %20 = arith.mulf %18, %19 : vector<1x128xf32>
    %21 = vector.extract_strided_slice %17 {offsets = [1, 0], sizes = [1, 128], strides = [1, 1]} : vector<2x128xf32> to vector<1x128xf32>
    %cst_12 = arith.constant 1.250000e-01 : f32
    %22 = vector.broadcast %cst_12 : f32 to vector<1x128xf32>
    %23 = arith.mulf %21, %22 : vector<1x128xf32>
    %24 = arith.mulf %20, %20 : vector<1x128xf32>
    %25 = arith.subf %23, %24 : vector<1x128xf32>
    %cst_13 = arith.constant 0.000000e+00 : f32
    %26 = vector.broadcast %cst_13 : f32 to vector<1x128xf32>
    %27 = arith.maximumf %25, %26 : vector<1x128xf32>
    %cst_14 = arith.constant 9.99999974E-6 : f32
    %28 = vector.broadcast %cst_14 : f32 to vector<1x128xf32>
    %29 = arith.addf %27, %28 : vector<1x128xf32>
    %30 = math.rsqrt %29 : vector<1x128xf32>
    %31 = arith.mulf %3, %30 : vector<1x128xf32>
    %32 = arith.mulf %20, %31 : vector<1x128xf32>
    %33 = arith.subf %4, %32 : vector<1x128xf32>
    %34 = vector.broadcast %31 : vector<1x128xf32> to vector<2x128xf32>
    %35 = arith.mulf %7, %34 : vector<2x128xf32>
    %36 = vector.broadcast %33 : vector<1x128xf32> to vector<2x128xf32>
    %37 = arith.addf %35, %36 : vector<2x128xf32>
    %cst_15 = arith.constant 0.000000e+00 : f32
    %38 = vector.broadcast %cst_15 : f32 to vector<2x128xf32>
    %39 = arith.maximumf %37, %38 : vector<2x128xf32>
    %cst_16 = arith.constant 0.000000e+00 : f32
    %40 = vector.broadcast %cst_16 : f32 to vector<2x128xf32>
    %41 = arith.minimumf %37, %40 : vector<2x128xf32>
    %42 = vector.broadcast %5 : f32 to vector<2x128xf32>
    %43 = arith.mulf %42, %41 : vector<2x128xf32>
    %44 = arith.addf %39, %43 : vector<2x128xf32>
    %c0_17 = arith.constant 0 : index
    %c1_18 = arith.constant 1 : index
    %c0_19 = arith.constant 0 : index
    %c0_20 = arith.constant 0 : index
    %45 = vector.load %arg1[%c0_17, %c1_18, %c0_19, %c0_20] : memref<3x2x128x128xbf16, #tpu.memory_space<vmem>>, vector<1x1x128x128xbf16>
    %46 = vector.shape_cast %45 : vector<1x1x128x128xbf16> to vector<128x128xbf16>
    %c2 = arith.constant 2 : index
    %c0_21 = arith.constant 0 : index
    %47 = vector.load %arg2[%c2, %c0_21] : memref<12x128xf32, #tpu.memory_space<vmem>>, vector<1x128xf32>
    %c3 = arith.constant 3 : index
    %c0_22 = arith.constant 0 : index
    %48 = vector.load %arg2[%c3, %c0_22] : memref<12x128xf32, #tpu.memory_space<vmem>>, vector<1x128xf32>
    %c1_23 = arith.constant 1 : index
    %49 = memref.load %arg3[%c1_23] : memref<6xf32, #tpu.memory_space<smem>>
    %50 = arith.truncf %44 : vector<2x128xf32> to vector<2x128xbf16>
    %cst_24 = arith.constant dense<0.000000e+00> : vector<2x128xf32>
    %51 = tpu.matmul %50, %46, %cst_24 {dimension_numbers = #tpu.dot_dimension_numbers<[1], [0], [0], [1], [0, 0, 1, 1], [], []>} : vector<2x128xbf16>, vector<128x128xbf16>, vector<2x128xf32> -> vector<2x128xf32>
    %cst_25 = arith.constant dense<0.000000e+00> : vector<128xf32>
    %52 = vector.multi_reduction <add>, %51, %cst_25 [0] : vector<2x128xf32> to vector<128xf32>
    %53 = vector.shape_cast %52 : vector<128xf32> to vector<1x128xf32>
    %54 = arith.mulf %51, %51 : vector<2x128xf32>
    %cst_26 = arith.constant dense<0.000000e+00> : vector<128xf32>
    %55 = vector.multi_reduction <add>, %54, %cst_26 [0] : vector<2x128xf32> to vector<128xf32>
    %56 = vector.shape_cast %55 : vector<128xf32> to vector<1x128xf32>
    %57 = tpu.concatenate %53, %56 in 0 : vector<1x128xf32>, vector<1x128xf32> -> vector<2x128xf32>
    %c64_i32_27 = arith.constant 64 : i32
    %58 = tpu.dynamic_rotate %57 by %c64_i32_27 dim 1 : vector<2x128xf32>, i32 -> vector<2x128xf32>
    %59 = arith.addf %57, %58 : vector<2x128xf32>
    %c32_i32_28 = arith.constant 32 : i32
    %60 = tpu.dynamic_rotate %59 by %c32_i32_28 dim 1 : vector<2x128xf32>, i32 -> vector<2x128xf32>
    %61 = arith.addf %59, %60 : vector<2x128xf32>
    %62 = vector.extract_strided_slice %61 {offsets = [0, 0], sizes = [1, 128], strides = [1, 1]} : vector<2x128xf32> to vector<1x128xf32>
    %cst_29 = arith.constant 1.250000e-01 : f32
    %63 = vector.broadcast %cst_29 : f32 to vector<1x128xf32>
    %64 = arith.mulf %62, %63 : vector<1x128xf32>
    %65 = vector.extract_strided_slice %61 {offsets = [1, 0], sizes = [1, 128], strides = [1, 1]} : vector<2x128xf32> to vector<1x128xf32>
    %cst_30 = arith.constant 1.250000e-01 : f32
    %66 = vector.broadcast %cst_30 : f32 to vector<1x128xf32>
    %67 = arith.mulf %65, %66 : vector<1x128xf32>
    %68 = arith.mulf %64, %64 : vector<1x128xf32>
    %69 = arith.subf %67, %68 : vector<1x128xf32>
    %cst_31 = arith.constant 0.000000e+00 : f32
    %70 = vector.broadcast %cst_31 : f32 to vector<1x128xf32>
    %71 = arith.maximumf %69, %70 : vector<1x128xf32>
    %cst_32 = arith.constant 9.99999974E-6 : f32
    %72 = vector.broadcast %cst_32 : f32 to vector<1x128xf32>
    %73 = arith.addf %71, %72 : vector<1x128xf32>
    %74 = math.rsqrt %73 : vector<1x128xf32>
    %75 = arith.mulf %47, %74 : vector<1x128xf32>
    %76 = arith.mulf %64, %75 : vector<1x128xf32>
    %77 = arith.subf %48, %76 : vector<1x128xf32>
    %78 = vector.broadcast %75 : vector<1x128xf32> to vector<2x128xf32>
    %79 = arith.mulf %51, %78 : vector<2x128xf32>
    %80 = vector.broadcast %77 : vector<1x128xf32> to vector<2x128xf32>
    %81 = arith.addf %79, %80 : vector<2x128xf32>
    %cst_33 = arith.constant 0.000000e+00 : f32
    %82 = vector.broadcast %cst_33 : f32 to vector<2x128xf32>
    %83 = arith.maximumf %81, %82 : vector<2x128xf32>
    %cst_34 = arith.constant 0.000000e+00 : f32
    %84 = vector.broadcast %cst_34 : f32 to vector<2x128xf32>
    %85 = arith.minimumf %81, %84 : vector<2x128xf32>
    %86 = vector.broadcast %49 : f32 to vector<2x128xf32>
    %87 = arith.mulf %86, %85 : vector<2x128xf32>
    %88 = arith.addf %83, %87 : vector<2x128xf32>
    %89 = arith.addf %0, %88 : vector<2x128xf32>
    %c1_35 = arith.constant 1 : index
    %c0_36 = arith.constant 0 : index
    %c0_37 = arith.constant 0 : index
    %c0_38 = arith.constant 0 : index
    %90 = vector.load %arg1[%c1_35, %c0_36, %c0_37, %c0_38] : memref<3x2x128x128xbf16, #tpu.memory_space<vmem>>, vector<1x1x128x128xbf16>
    %91 = vector.shape_cast %90 : vector<1x1x128x128xbf16> to vector<128x128xbf16>
    %c4 = arith.constant 4 : index
    %c0_39 = arith.constant 0 : index
    %92 = vector.load %arg2[%c4, %c0_39] : memref<12x128xf32, #tpu.memory_space<vmem>>, vector<1x128xf32>
    %c5 = arith.constant 5 : index
    %c0_40 = arith.constant 0 : index
    %93 = vector.load %arg2[%c5, %c0_40] : memref<12x128xf32, #tpu.memory_space<vmem>>, vector<1x128xf32>
    %c2_41 = arith.constant 2 : index
    %94 = memref.load %arg3[%c2_41] : memref<6xf32, #tpu.memory_space<smem>>
    %95 = arith.truncf %89 : vector<2x128xf32> to vector<2x128xbf16>
    %cst_42 = arith.constant dense<0.000000e+00> : vector<2x128xf32>
    %96 = tpu.matmul %95, %91, %cst_42 {dimension_numbers = #tpu.dot_dimension_numbers<[1], [0], [0], [1], [0, 0, 1, 1], [], []>} : vector<2x128xbf16>, vector<128x128xbf16>, vector<2x128xf32> -> vector<2x128xf32>
    %cst_43 = arith.constant dense<0.000000e+00> : vector<128xf32>
    %97 = vector.multi_reduction <add>, %96, %cst_43 [0] : vector<2x128xf32> to vector<128xf32>
    %98 = vector.shape_cast %97 : vector<128xf32> to vector<1x128xf32>
    %99 = arith.mulf %96, %96 : vector<2x128xf32>
    %cst_44 = arith.constant dense<0.000000e+00> : vector<128xf32>
    %100 = vector.multi_reduction <add>, %99, %cst_44 [0] : vector<2x128xf32> to vector<128xf32>
    %101 = vector.shape_cast %100 : vector<128xf32> to vector<1x128xf32>
    %102 = tpu.concatenate %98, %101 in 0 : vector<1x128xf32>, vector<1x128xf32> -> vector<2x128xf32>
    %c64_i32_45 = arith.constant 64 : i32
    %103 = tpu.dynamic_rotate %102 by %c64_i32_45 dim 1 : vector<2x128xf32>, i32 -> vector<2x128xf32>
    %104 = arith.addf %102, %103 : vector<2x128xf32>
    %c32_i32_46 = arith.constant 32 : i32
    %105 = tpu.dynamic_rotate %104 by %c32_i32_46 dim 1 : vector<2x128xf32>, i32 -> vector<2x128xf32>
    %106 = arith.addf %104, %105 : vector<2x128xf32>
    %107 = vector.extract_strided_slice %106 {offsets = [0, 0], sizes = [1, 128], strides = [1, 1]} : vector<2x128xf32> to vector<1x128xf32>
    %cst_47 = arith.constant 1.250000e-01 : f32
    %108 = vector.broadcast %cst_47 : f32 to vector<1x128xf32>
    %109 = arith.mulf %107, %108 : vector<1x128xf32>
    %110 = vector.extract_strided_slice %106 {offsets = [1, 0], sizes = [1, 128], strides = [1, 1]} : vector<2x128xf32> to vector<1x128xf32>
    %cst_48 = arith.constant 1.250000e-01 : f32
    %111 = vector.broadcast %cst_48 : f32 to vector<1x128xf32>
    %112 = arith.mulf %110, %111 : vector<1x128xf32>
    %113 = arith.mulf %109, %109 : vector<1x128xf32>
    %114 = arith.subf %112, %113 : vector<1x128xf32>
    %cst_49 = arith.constant 0.000000e+00 : f32
    %115 = vector.broadcast %cst_49 : f32 to vector<1x128xf32>
    %116 = arith.maximumf %114, %115 : vector<1x128xf32>
    %cst_50 = arith.constant 9.99999974E-6 : f32
    %117 = vector.broadcast %cst_50 : f32 to vector<1x128xf32>
    %118 = arith.addf %116, %117 : vector<1x128xf32>
    %119 = math.rsqrt %118 : vector<1x128xf32>
    %120 = arith.mulf %92, %119 : vector<1x128xf32>
    %121 = arith.mulf %109, %120 : vector<1x128xf32>
    %122 = arith.subf %93, %121 : vector<1x128xf32>
    %123 = vector.broadcast %120 : vector<1x128xf32> to vector<2x128xf32>
    %124 = arith.mulf %96, %123 : vector<2x128xf32>
    %125 = vector.broadcast %122 : vector<1x128xf32> to vector<2x128xf32>
    %126 = arith.addf %124, %125 : vector<2x128xf32>
    %cst_51 = arith.constant 0.000000e+00 : f32
    %127 = vector.broadcast %cst_51 : f32 to vector<2x128xf32>
    %128 = arith.maximumf %126, %127 : vector<2x128xf32>
    %cst_52 = arith.constant 0.000000e+00 : f32
    %129 = vector.broadcast %cst_52 : f32 to vector<2x128xf32>
    %130 = arith.minimumf %126, %129 : vector<2x128xf32>
    %131 = vector.broadcast %94 : f32 to vector<2x128xf32>
    %132 = arith.mulf %131, %130 : vector<2x128xf32>
    %133 = arith.addf %128, %132 : vector<2x128xf32>
    %c1_53 = arith.constant 1 : index
    %c1_54 = arith.constant 1 : index
    %c0_55 = arith.constant 0 : index
    %c0_56 = arith.constant 0 : index
    %134 = vector.load %arg1[%c1_53, %c1_54, %c0_55, %c0_56] : memref<3x2x128x128xbf16, #tpu.memory_space<vmem>>, vector<1x1x128x128xbf16>
    %135 = vector.shape_cast %134 : vector<1x1x128x128xbf16> to vector<128x128xbf16>
    %c6 = arith.constant 6 : index
    %c0_57 = arith.constant 0 : index
    %136 = vector.load %arg2[%c6, %c0_57] : memref<12x128xf32, #tpu.memory_space<vmem>>, vector<1x128xf32>
    %c7 = arith.constant 7 : index
    %c0_58 = arith.constant 0 : index
    %137 = vector.load %arg2[%c7, %c0_58] : memref<12x128xf32, #tpu.memory_space<vmem>>, vector<1x128xf32>
    %c3_59 = arith.constant 3 : index
    %138 = memref.load %arg3[%c3_59] : memref<6xf32, #tpu.memory_space<smem>>
    %139 = arith.truncf %133 : vector<2x128xf32> to vector<2x128xbf16>
    %cst_60 = arith.constant dense<0.000000e+00> : vector<2x128xf32>
    %140 = tpu.matmul %139, %135, %cst_60 {dimension_numbers = #tpu.dot_dimension_numbers<[1], [0], [0], [1], [0, 0, 1, 1], [], []>} : vector<2x128xbf16>, vector<128x128xbf16>, vector<2x128xf32> -> vector<2x128xf32>
    %cst_61 = arith.constant dense<0.000000e+00> : vector<128xf32>
    %141 = vector.multi_reduction <add>, %140, %cst_61 [0] : vector<2x128xf32> to vector<128xf32>
    %142 = vector.shape_cast %141 : vector<128xf32> to vector<1x128xf32>
    %143 = arith.mulf %140, %140 : vector<2x128xf32>
    %cst_62 = arith.constant dense<0.000000e+00> : vector<128xf32>
    %144 = vector.multi_reduction <add>, %143, %cst_62 [0] : vector<2x128xf32> to vector<128xf32>
    %145 = vector.shape_cast %144 : vector<128xf32> to vector<1x128xf32>
    %146 = tpu.concatenate %142, %145 in 0 : vector<1x128xf32>, vector<1x128xf32> -> vector<2x128xf32>
    %c64_i32_63 = arith.constant 64 : i32
    %147 = tpu.dynamic_rotate %146 by %c64_i32_63 dim 1 : vector<2x128xf32>, i32 -> vector<2x128xf32>
    %148 = arith.addf %146, %147 : vector<2x128xf32>
    %c32_i32_64 = arith.constant 32 : i32
    %149 = tpu.dynamic_rotate %148 by %c32_i32_64 dim 1 : vector<2x128xf32>, i32 -> vector<2x128xf32>
    %150 = arith.addf %148, %149 : vector<2x128xf32>
    %151 = vector.extract_strided_slice %150 {offsets = [0, 0], sizes = [1, 128], strides = [1, 1]} : vector<2x128xf32> to vector<1x128xf32>
    %cst_65 = arith.constant 1.250000e-01 : f32
    %152 = vector.broadcast %cst_65 : f32 to vector<1x128xf32>
    %153 = arith.mulf %151, %152 : vector<1x128xf32>
    %154 = vector.extract_strided_slice %150 {offsets = [1, 0], sizes = [1, 128], strides = [1, 1]} : vector<2x128xf32> to vector<1x128xf32>
    %cst_66 = arith.constant 1.250000e-01 : f32
    %155 = vector.broadcast %cst_66 : f32 to vector<1x128xf32>
    %156 = arith.mulf %154, %155 : vector<1x128xf32>
    %157 = arith.mulf %153, %153 : vector<1x128xf32>
    %158 = arith.subf %156, %157 : vector<1x128xf32>
    %cst_67 = arith.constant 0.000000e+00 : f32
    %159 = vector.broadcast %cst_67 : f32 to vector<1x128xf32>
    %160 = arith.maximumf %158, %159 : vector<1x128xf32>
    %cst_68 = arith.constant 9.99999974E-6 : f32
    %161 = vector.broadcast %cst_68 : f32 to vector<1x128xf32>
    %162 = arith.addf %160, %161 : vector<1x128xf32>
    %163 = math.rsqrt %162 : vector<1x128xf32>
    %164 = arith.mulf %136, %163 : vector<1x128xf32>
    %165 = arith.mulf %153, %164 : vector<1x128xf32>
    %166 = arith.subf %137, %165 : vector<1x128xf32>
    %167 = vector.broadcast %164 : vector<1x128xf32> to vector<2x128xf32>
    %168 = arith.mulf %140, %167 : vector<2x128xf32>
    %169 = vector.broadcast %166 : vector<1x128xf32> to vector<2x128xf32>
    %170 = arith.addf %168, %169 : vector<2x128xf32>
    %cst_69 = arith.constant 0.000000e+00 : f32
    %171 = vector.broadcast %cst_69 : f32 to vector<2x128xf32>
    %172 = arith.maximumf %170, %171 : vector<2x128xf32>
    %cst_70 = arith.constant 0.000000e+00 : f32
    %173 = vector.broadcast %cst_70 : f32 to vector<2x128xf32>
    %174 = arith.minimumf %170, %173 : vector<2x128xf32>
    %175 = vector.broadcast %138 : f32 to vector<2x128xf32>
    %176 = arith.mulf %175, %174 : vector<2x128xf32>
    %177 = arith.addf %172, %176 : vector<2x128xf32>
    %178 = arith.addf %89, %177 : vector<2x128xf32>
    %c2_71 = arith.constant 2 : index
    %c0_72 = arith.constant 0 : index
    %c0_73 = arith.constant 0 : index
    %c0_74 = arith.constant 0 : index
    %179 = vector.load %arg1[%c2_71, %c0_72, %c0_73, %c0_74] : memref<3x2x128x128xbf16, #tpu.memory_space<vmem>>, vector<1x1x128x128xbf16>
    %180 = vector.shape_cast %179 : vector<1x1x128x128xbf16> to vector<128x128xbf16>
    %c8 = arith.constant 8 : index
    %c0_75 = arith.constant 0 : index
    %181 = vector.load %arg2[%c8, %c0_75] : memref<12x128xf32, #tpu.memory_space<vmem>>, vector<1x128xf32>
    %c9 = arith.constant 9 : index
    %c0_76 = arith.constant 0 : index
    %182 = vector.load %arg2[%c9, %c0_76] : memref<12x128xf32, #tpu.memory_space<vmem>>, vector<1x128xf32>
    %c4_77 = arith.constant 4 : index
    %183 = memref.load %arg3[%c4_77] : memref<6xf32, #tpu.memory_space<smem>>
    %184 = arith.truncf %178 : vector<2x128xf32> to vector<2x128xbf16>
    %cst_78 = arith.constant dense<0.000000e+00> : vector<2x128xf32>
    %185 = tpu.matmul %184, %180, %cst_78 {dimension_numbers = #tpu.dot_dimension_numbers<[1], [0], [0], [1], [0, 0, 1, 1], [], []>} : vector<2x128xbf16>, vector<128x128xbf16>, vector<2x128xf32> -> vector<2x128xf32>
    %cst_79 = arith.constant dense<0.000000e+00> : vector<128xf32>
    %186 = vector.multi_reduction <add>, %185, %cst_79 [0] : vector<2x128xf32> to vector<128xf32>
    %187 = vector.shape_cast %186 : vector<128xf32> to vector<1x128xf32>
    %188 = arith.mulf %185, %185 : vector<2x128xf32>
    %cst_80 = arith.constant dense<0.000000e+00> : vector<128xf32>
    %189 = vector.multi_reduction <add>, %188, %cst_80 [0] : vector<2x128xf32> to vector<128xf32>
    %190 = vector.shape_cast %189 : vector<128xf32> to vector<1x128xf32>
    %191 = tpu.concatenate %187, %190 in 0 : vector<1x128xf32>, vector<1x128xf32> -> vector<2x128xf32>
    %c64_i32_81 = arith.constant 64 : i32
    %192 = tpu.dynamic_rotate %191 by %c64_i32_81 dim 1 : vector<2x128xf32>, i32 -> vector<2x128xf32>
    %193 = arith.addf %191, %192 : vector<2x128xf32>
    %c32_i32_82 = arith.constant 32 : i32
    %194 = tpu.dynamic_rotate %193 by %c32_i32_82 dim 1 : vector<2x128xf32>, i32 -> vector<2x128xf32>
    %195 = arith.addf %193, %194 : vector<2x128xf32>
    %196 = vector.extract_strided_slice %195 {offsets = [0, 0], sizes = [1, 128], strides = [1, 1]} : vector<2x128xf32> to vector<1x128xf32>
    %cst_83 = arith.constant 1.250000e-01 : f32
    %197 = vector.broadcast %cst_83 : f32 to vector<1x128xf32>
    %198 = arith.mulf %196, %197 : vector<1x128xf32>
    %199 = vector.extract_strided_slice %195 {offsets = [1, 0], sizes = [1, 128], strides = [1, 1]} : vector<2x128xf32> to vector<1x128xf32>
    %cst_84 = arith.constant 1.250000e-01 : f32
    %200 = vector.broadcast %cst_84 : f32 to vector<1x128xf32>
    %201 = arith.mulf %199, %200 : vector<1x128xf32>
    %202 = arith.mulf %198, %198 : vector<1x128xf32>
    %203 = arith.subf %201, %202 : vector<1x128xf32>
    %cst_85 = arith.constant 0.000000e+00 : f32
    %204 = vector.broadcast %cst_85 : f32 to vector<1x128xf32>
    %205 = arith.maximumf %203, %204 : vector<1x128xf32>
    %cst_86 = arith.constant 9.99999974E-6 : f32
    %206 = vector.broadcast %cst_86 : f32 to vector<1x128xf32>
    %207 = arith.addf %205, %206 : vector<1x128xf32>
    %208 = math.rsqrt %207 : vector<1x128xf32>
    %209 = arith.mulf %181, %208 : vector<1x128xf32>
    %210 = arith.mulf %198, %209 : vector<1x128xf32>
    %211 = arith.subf %182, %210 : vector<1x128xf32>
    %212 = vector.broadcast %209 : vector<1x128xf32> to vector<2x128xf32>
    %213 = arith.mulf %185, %212 : vector<2x128xf32>
    %214 = vector.broadcast %211 : vector<1x128xf32> to vector<2x128xf32>
    %215 = arith.addf %213, %214 : vector<2x128xf32>
    %cst_87 = arith.constant 0.000000e+00 : f32
    %216 = vector.broadcast %cst_87 : f32 to vector<2x128xf32>
    %217 = arith.maximumf %215, %216 : vector<2x128xf32>
    %cst_88 = arith.constant 0.000000e+00 : f32
    %218 = vector.broadcast %cst_88 : f32 to vector<2x128xf32>
    %219 = arith.minimumf %215, %218 : vector<2x128xf32>
    %220 = vector.broadcast %183 : f32 to vector<2x128xf32>
    %221 = arith.mulf %220, %219 : vector<2x128xf32>
    %222 = arith.addf %217, %221 : vector<2x128xf32>
    %c2_89 = arith.constant 2 : index
    %c1_90 = arith.constant 1 : index
    %c0_91 = arith.constant 0 : index
    %c0_92 = arith.constant 0 : index
    %223 = vector.load %arg1[%c2_89, %c1_90, %c0_91, %c0_92] : memref<3x2x128x128xbf16, #tpu.memory_space<vmem>>, vector<1x1x128x128xbf16>
    %224 = vector.shape_cast %223 : vector<1x1x128x128xbf16> to vector<128x128xbf16>
    %c10 = arith.constant 10 : index
    %c0_93 = arith.constant 0 : index
    %225 = vector.load %arg2[%c10, %c0_93] : memref<12x128xf32, #tpu.memory_space<vmem>>, vector<1x128xf32>
    %c11 = arith.constant 11 : index
    %c0_94 = arith.constant 0 : index
    %226 = vector.load %arg2[%c11, %c0_94] : memref<12x128xf32, #tpu.memory_space<vmem>>, vector<1x128xf32>
    %c5_95 = arith.constant 5 : index
    %227 = memref.load %arg3[%c5_95] : memref<6xf32, #tpu.memory_space<smem>>
    %228 = arith.truncf %222 : vector<2x128xf32> to vector<2x128xbf16>
    %cst_96 = arith.constant dense<0.000000e+00> : vector<2x128xf32>
    %229 = tpu.matmul %228, %224, %cst_96 {dimension_numbers = #tpu.dot_dimension_numbers<[1], [0], [0], [1], [0, 0, 1, 1], [], []>} : vector<2x128xbf16>, vector<128x128xbf16>, vector<2x128xf32> -> vector<2x128xf32>
    %cst_97 = arith.constant dense<0.000000e+00> : vector<128xf32>
    %230 = vector.multi_reduction <add>, %229, %cst_97 [0] : vector<2x128xf32> to vector<128xf32>
    %231 = vector.shape_cast %230 : vector<128xf32> to vector<1x128xf32>
    %232 = arith.mulf %229, %229 : vector<2x128xf32>
    %cst_98 = arith.constant dense<0.000000e+00> : vector<128xf32>
    %233 = vector.multi_reduction <add>, %232, %cst_98 [0] : vector<2x128xf32> to vector<128xf32>
    %234 = vector.shape_cast %233 : vector<128xf32> to vector<1x128xf32>
    %235 = tpu.concatenate %231, %234 in 0 : vector<1x128xf32>, vector<1x128xf32> -> vector<2x128xf32>
    %c64_i32_99 = arith.constant 64 : i32
    %236 = tpu.dynamic_rotate %235 by %c64_i32_99 dim 1 : vector<2x128xf32>, i32 -> vector<2x128xf32>
    %237 = arith.addf %235, %236 : vector<2x128xf32>
    %c32_i32_100 = arith.constant 32 : i32
    %238 = tpu.dynamic_rotate %237 by %c32_i32_100 dim 1 : vector<2x128xf32>, i32 -> vector<2x128xf32>
    %239 = arith.addf %237, %238 : vector<2x128xf32>
    %240 = vector.extract_strided_slice %239 {offsets = [0, 0], sizes = [1, 128], strides = [1, 1]} : vector<2x128xf32> to vector<1x128xf32>
    %cst_101 = arith.constant 1.250000e-01 : f32
    %241 = vector.broadcast %cst_101 : f32 to vector<1x128xf32>
    %242 = arith.mulf %240, %241 : vector<1x128xf32>
    %243 = vector.extract_strided_slice %239 {offsets = [1, 0], sizes = [1, 128], strides = [1, 1]} : vector<2x128xf32> to vector<1x128xf32>
    %cst_102 = arith.constant 1.250000e-01 : f32
    %244 = vector.broadcast %cst_102 : f32 to vector<1x128xf32>
    %245 = arith.mulf %243, %244 : vector<1x128xf32>
    %246 = arith.mulf %242, %242 : vector<1x128xf32>
    %247 = arith.subf %245, %246 : vector<1x128xf32>
    %cst_103 = arith.constant 0.000000e+00 : f32
    %248 = vector.broadcast %cst_103 : f32 to vector<1x128xf32>
    %249 = arith.maximumf %247, %248 : vector<1x128xf32>
    %cst_104 = arith.constant 9.99999974E-6 : f32
    %250 = vector.broadcast %cst_104 : f32 to vector<1x128xf32>
    %251 = arith.addf %249, %250 : vector<1x128xf32>
    %252 = math.rsqrt %251 : vector<1x128xf32>
    %253 = arith.mulf %225, %252 : vector<1x128xf32>
    %254 = arith.mulf %242, %253 : vector<1x128xf32>
    %255 = arith.subf %226, %254 : vector<1x128xf32>
    %256 = vector.broadcast %253 : vector<1x128xf32> to vector<2x128xf32>
    %257 = arith.mulf %229, %256 : vector<2x128xf32>
    %258 = vector.broadcast %255 : vector<1x128xf32> to vector<2x128xf32>
    %259 = arith.addf %257, %258 : vector<2x128xf32>
    %cst_105 = arith.constant 0.000000e+00 : f32
    %260 = vector.broadcast %cst_105 : f32 to vector<2x128xf32>
    %261 = arith.maximumf %259, %260 : vector<2x128xf32>
    %cst_106 = arith.constant 0.000000e+00 : f32
    %262 = vector.broadcast %cst_106 : f32 to vector<2x128xf32>
    %263 = arith.minimumf %259, %262 : vector<2x128xf32>
    %264 = vector.broadcast %227 : f32 to vector<2x128xf32>
    %265 = arith.mulf %264, %263 : vector<2x128xf32>
    %266 = arith.addf %261, %265 : vector<2x128xf32>
    %267 = arith.addf %178, %266 : vector<2x128xf32>
    %c0_107 = arith.constant 0 : index
    %c0_108 = arith.constant 0 : index
    %268 = vector.load %arg0[%c0_107, %c0_108] : memref<2x128xf32, #tpu.memory_space<vmem>>, vector<2x128xf32>
    %269 = arith.addf %268, %267 : vector<2x128xf32>
    %c0_109 = arith.constant 0 : index
    %c0_110 = arith.constant 0 : index
    %270 = vector.load %arg4[%c0_109, %c0_110] : memref<2x128xf32, #tpu.memory_space<vmem>>, vector<2x128xf32>
    tpu.vector_store %arg4[%c0_109, %c0_110], %269 {strides = array<i32>} : memref<2x128xf32, #tpu.memory_space<vmem>>, vector<2x128xf32>,
    return
  }
}

</mosaic_0001>

<bundles_post_ra>
// kernel: tpu_custom_call.1
= control target key start
LH: loop header
LB: loop body
LE: loop exit
PB: predicated region body
PF: predicated region fallthrough
CT: control target
= control target key end

     0   :  { %9 = vsyncpa [#allocation3], 0  ;;  %s1664_s0 = inlined_call_operand.hbm [shape: f32[2,128], index: 0, kind: input, shape index: {}]   ;;  %s1665_s1 = inlined_call_operand.hbm [shape: bf16[3,2,128,128], index: 1, kind: input, shape index: {}]   ;;  %s1666_s2 = inlined_call_operand.hbm [shape: f32[12,128], index: 2, kind: input, shape index: {}]   ;;  %s1667_s3 = inlined_call_operand.vmem [shape: f32[6], index: 3, kind: input, shape index: {}]   ;;  %s1668_s4 = inlined_call_operand.hbm [shape: f32[2,128], index: 4, kind: output, shape index: {}]  }
   0x1   :  { %10 = vsyncpa [#allocation7], 0 }
   0x2   :  { %11 = vsyncpa [#allocation5], 0 }
   0x3   :  { %12 = vsyncpa [#allocation4], 0  ;;  %s1460_s15 = smov [#allocation6]  }
   0x4   :  { %s28_s16 = sshll.u32 %s1460_s15, 4  ;;  %s29_s16 = int_to_ptr.vmem [resolvable:$true] %s28_s16 }
   0x5   :  { %s1368_s17 = scalar_lea.vmem %s29_s16, 6144  ;;  %p1373_p1 = scmp.lt.s32.totalorder %s29_s16, %s29_s16 }
   0x6   :  { %p1369_p0 = scmp.ne.s32.totalorder %s29_s16, %s1368_s17  ;;  %p1374_p2 = scmp.lt.s32.totalorder %s1368_s17, %s1368_s17 }
   0x8   :  { %p1375_p3 = por %p1374_p2, %p1373_p1 }
   0xa   :  { %p1376_p4 = pnand %p1375_p3, %p1369_p0 }
   0xc   :  { %1379 = shalt.err (!%p1376_p4)
}
   0xd   :  { %s1461_s18 = smov 64   ;;  %s1462_s19 = smov 4  }
   0xe   :  { %34 = dma.hbm_to_vmem [thread:$0]  %s1665_s1, 6144, %s29_s16, [#allocation7], %s1461_s18, %s1461_s18, %s1462_s19  }
   0xf   :  { %s1463_s22 = smov [#allocation2]   ;;  %s1464_s24 = smov [#allocation8]  }
  0x10   :  { %s19_s23 = sshll.u32 %s1463_s22, 4  ;;  %s40_s25 = sshll.u32 %s1464_s24, 4  ;;  %s20_s23 = int_to_ptr.vmem [resolvable:$true] %s19_s23  ;;  %s41_s25 = int_to_ptr.vmem [resolvable:$true] %s40_s25 }
  0x11   :  { %s1388_s26 = scalar_lea.vmem %s20_s23, 32  ;;  %p1393_p6 = scmp.lt.s32.totalorder %s20_s23, %s20_s23 }
  0x12   :  { %p1389_p5 = scmp.ne.s32.totalorder %s20_s23, %s1388_s26  ;;  %p1394_p7 = scmp.lt.s32.totalorder %s1388_s26, %s1388_s26 }
  0x14   :  { %p1395_p8 = por %p1394_p7, %p1393_p6 }
  0x16   :  { %p1396_p9 = pnand %p1395_p8, %p1389_p5 }
  0x18   :  { %1399 = shalt.err (!%p1396_p9)
}
  0x19   :  { %22 = dma.hbm_to_vmem [thread:$0]  %s1664_s0, 32, %s20_s23, [#allocation3]  }
  0x1a   :  { %s53_s1 = sshll.u32 %s1667_s3, 4  ;;  %s1408_s5 = scalar_lea.vmem %s41_s25, 256  ;;  %s54_s1 = int_to_ptr.vmem [resolvable:$true] %s53_s1 }
  0x1b   :  { %p1409_p10 = scmp.ne.s32.totalorder %s41_s25, %s1408_s5  ;;  %p1413_p11 = scmp.lt.s32.totalorder %s41_s25, %s41_s25 }
  0x1c   :  { %p1414_p12 = scmp.lt.s32.totalorder %s1408_s5, %s1408_s5 }
  0x1e   :  { %p1415_p13 = por %p1414_p12, %p1413_p11 }
  0x20   :  { %p1416_p0 = pnand %p1415_p13, %p1409_p10 }
  0x22   :  { %1419 = shalt.err (!%p1416_p0)
}
  0x23   :  { %s1465_s6 = smov 128   ;;  %s1466_s7 = smov 8  }
  0x24   :  { %46 = dma.hbm_to_vmem [thread:$0]  %s1666_s2, 256, %s41_s25, [#allocation7], %s1465_s6, %s1465_s6, %s1466_s7  }
  0x25   :  { %s1420_s0 = scalar_lea.vmem %s54_s1, 16  ;;  %p1425_p2 = scmp.lt.s32.totalorder %s54_s1, %s54_s1 }
  0x26   :  { %p1421_p1 = scmp.ne.s32.totalorder %s54_s1, %s1420_s0  ;;  %p1426_p3 = scmp.lt.s32.totalorder %s1420_s0, %s1420_s0 }
  0x28   :  { %p1427_p4 = por %p1426_p3, %p1425_p2 }
  0x2a   :  { %p1428_p5 = pnand %p1427_p4, %p1421_p1 }
  0x2c   :  { %1431 = shalt.err (!%p1428_p5)
}
  0x2d   :  { %s1467_s3 = smov [#allocation9]  }
  0x2e   :  { %56 = dma.vmem_to_smem %s54_s1, 16, %s1467_s3, [#allocation5]  }
  0x2f   :  { %1452 = dma.done.wait [#allocation3], 32  }
  0x30   :  { %1453 = vsyncadd [#allocation3], 4294967264 }
  0x31   :  { %1454 = dma.done.wait [#allocation7], 6400  }
  0x32   :  { %1455 = vsyncadd [#allocation7], 4294960896 }
  0x33   :  { %1456 = dma.done.wait [#allocation5], 16  }
  0x34   :  { %1457 = vsyncadd [#allocation5], 4294967280 }
  0x35   :  { %69 = sfence }
  0x36   :  { %v1300_v0 = vld [vmem:[#allocation6 + $0x38] sm:$0xff]   ;;  %v1468_v1 = vmov 0.0   ;;  %v1301_v2 = vld [vmem:[#allocation6 + $0x30] sm:$0xff]   ;;  %vm1469_vm0 = vmmov 0   ;;  %v1302_v3 = vld [vmem:[#allocation6 + $0x28] sm:$0xff]   ;;  %vm180_vm1 = vcmask 1041408   ;;  %v219_v49 = vlaneseq }
  0x37   :  { %1168 = vmatprep.subr.bf16.mxu0 %v1468_v1  ;;  %1188 = vmatprep.subr.bf16.mxu1 %v1468_v1  ;;  %v1303_v4 = vld [vmem:[#allocation6 + $0x20] sm:$0xff]   ;;  %v1304_v5 = vld [vmem:[#allocation6 + $0x18] sm:$0xff]   ;;  %v1305_v6 = vld [vmem:[#allocation6 + $0x10] sm:$0xff]   ;;  %vm196_vm2 = vcmask 1040384   ;;  %s1470_s2 = smov 32   ;;  %s90_s10 = sld [smem:[#allocation9]] }
  0x38   :  { %1169 = vmatpush3.bf16.msra.mxu0 %v1300_v0  ;;  %1184 = vmatprep.mubr.msk.bf16.mxu0 %vm1469_vm0, %v1468_v1  ;;  %v1306_v7 = vld [vmem:[#allocation6 + $0x8] sm:$0xff]   ;;  %v1307_v8 = vld [vmem:[#allocation6] sm:$0xff]   ;;  %v1523_v9 = vld [vmem:[#allocation2] sm:$0x3]  ;;  %v220_v50 = vshrl.u32 %v219_v49, 7  ;;  %s1069_s11 = sld [smem:[#allocation9 + $0x1]] }
  0x39   :  { %1170 = vmatprep.subr.bf16.mxu0 %v1468_v1  ;;  %1204 = vmatprep.mubr.msk.bf16.mxu1 %vm1469_vm0, %v1468_v1  ;;  %v91_v10 = vpack.c.bf16 %v1523_v9, %v1523_v9  ;;  %v1308_v33 = vld [vmem:[#allocation6 + $0x78] sm:$0xff]   ;;  %v1309_v34 = vld [vmem:[#allocation6 + $0x70] sm:$0xff]   ;;  %v1310_v35 = vld [vmem:[#allocation6 + $0x68] sm:$0xff]   ;;  %s1078_s12 = sld [smem:[#allocation9 + $0x2]]  ;;  %s1471_s16 = smov [#allocation10]  }
  0x3a   :  { %1189 = vmatpush3.bf16.msra.mxu1 %v1308_v33  ;;  %v1311_v36 = vld [vmem:[#allocation6 + $0x60] sm:$0xff]   ;;  %v1312_v37 = vld [vmem:[#allocation6 + $0x58] sm:$0xff]   ;;  %v1313_v38 = vld [vmem:[#allocation6 + $0x50] sm:$0xff]   ;;  %v1549_v53 = vsub.s32 0, %v220_v50  ;;  %s1087_s13 = sld [smem:[#allocation9 + $0x3]]  ;;  %s1050_s17 = sshll.u32 %s1471_s16, 4  ;;  %s1051_s17 = int_to_ptr.vmem [resolvable:$true] %s1050_s17 }
  0x3b   :  { %1190 = vmatprep.subr.bf16.mxu1 %v1468_v1  ;;  %v1314_v39 = vld [vmem:[#allocation6 + $0x48] sm:$0xff]   ;;  %v1315_v40 = vld [vmem:[#allocation6 + $0x40] sm:$0xff]   ;;  %v1320_v33 = vld [vmem:[#allocation6 + $0x98] sm:$0xff]   ;;  %s1096_s14 = sld [smem:[#allocation9 + $0x4]]  ;;  %p1437_p7 = scmp.lt.s32.totalorder %s1051_s17, %s1051_s17 }
  0x3c   :  { %1171 = vmatpush3.bf16.msra.mxu0 %v1301_v2  ;;  %v88_v52 = vld [vmem:[#allocation8] sm:$0x1]  ;;  %v89_v56 = vld [vmem:[#allocation8 + $0x1] sm:$0x1]  ;;  %v252_v49 = vld [vmem:[#allocation8 + $0x3] sm:$0x1] }
  0x3d   :  { %1172 = vmatprep.subr.bf16.mxu0 %v1468_v1  ;;  %v231_v63 = vstv %s90_s10  ;;  %s1105_s15 = sld [smem:[#allocation9 + $0x5]] }
  0x3e   :  { %1191 = vmatpush3.bf16.msra.mxu1 %v1309_v34  ;;  %v1321_v34 = vld [vmem:[#allocation6 + $0x90] sm:$0xff]  }
  0x3f   :  { %1192 = vmatprep.subr.bf16.mxu1 %v1468_v1 }
  0x40   :  { %1173 = vmatpush3.bf16.msra.mxu0 %v1302_v3 }
  0x41   :  { %1174 = vmatprep.subr.bf16.mxu0 %v1468_v1 }
  0x42   :  { %1193 = vmatpush3.bf16.msra.mxu1 %v1310_v35  ;;  %v1322_v35 = vld [vmem:[#allocation6 + $0x88] sm:$0xff]  }
  0x43   :  { %1194 = vmatprep.subr.bf16.mxu1 %v1468_v1 }
  0x44   :  { %1175 = vmatpush3.bf16.msra.mxu0 %v1303_v4 }
  0x45   :  { %1176 = vmatprep.subr.bf16.mxu0 %v1468_v1 }
  0x46   :  { %1195 = vmatpush3.bf16.msra.mxu1 %v1311_v36  ;;  %v1323_v36 = vld [vmem:[#allocation6 + $0x80] sm:$0xff]  }
  0x47   :  { %1196 = vmatprep.subr.bf16.mxu1 %v1468_v1 }
  0x48   :  { %1177 = vmatpush3.bf16.msra.mxu0 %v1304_v5 }
  0x49   :  { %1178 = vmatprep.subr.bf16.mxu0 %v1468_v1 }
  0x4a   :  { %1197 = vmatpush3.bf16.msra.mxu1 %v1312_v37 }
  0x4b   :  { %1198 = vmatprep.subr.bf16.mxu1 %v1468_v1 }
  0x4c   :  { %1179 = vmatpush3.bf16.msra.mxu0 %v1305_v6 }
  0x4d   :  { %1180 = vmatprep.subr.bf16.mxu0 %v1468_v1 }
  0x4e   :  { %1199 = vmatpush3.bf16.msra.mxu1 %v1313_v38 }
  0x4f   :  { %1200 = vmatprep.subr.bf16.mxu1 %v1468_v1 }
  0x50   :  { %1181 = vmatpush3.bf16.msra.mxu0 %v1306_v7 }
  0x51   :  { %1182 = vmatprep.subr.bf16.mxu0 %v1468_v1 }
  0x52   :  { %1201 = vmatpush3.bf16.msra.mxu1 %v1314_v39 }
  0x53   :  { %1202 = vmatprep.subr.bf16.mxu1 %v1468_v1 }
  0x54   :  { %1183 = vmatpush3.bf16.msra.mxu0 %v1307_v8 }
  0x55   :  { %1208 = vmatprep.subr.bf16.mxu0 %v1468_v1 }
  0x56   :  { %1203 = vmatpush3.bf16.msra.mxu1 %v1315_v40 }
  0x57   :  { %1185 = vmatmul.mubr.bf16.vlgmr.msra.gmra.mxu0 %v91_v10  ;;  %1228 = vmatprep.subr.bf16.mxu1 %v1468_v1 }
  0x58   :  { %1224 = vmatprep.mubr.msk.bf16.mxu0 %vm1469_vm0, %v1468_v1 }
 0x117   :  { %v1531_v11 = vpop.f32.mrf.mxu0 }
 0x118   :  { %v181_v12 = vsel %vm180_vm1, %v1531_v11, 0.0  ;;  %v188_v13 = vmul.f32 %v1531_v11, %v1531_v11 }
 0x119   :  { %v182_v14 = vrot.slane %v181_v12, 4  ;;  %v1186_v15 = vpop.f32.mrf.mxu0 }
 0x11a   :  { %v189_v16 = vsel %vm180_vm1, %v188_v13, 0.0 }
 0x11b   :  { %v183_v17 = vadd.f32 %v182_v14, %v181_v12  ;;  %v190_v18 = vrot.slane %v189_v16, 4  ;;  %v177_v19 = vpop.f32.mrf.mxu0 }
 0x11d   :  { %v184_v20 = vrot.slane %v183_v17, 2  ;;  %v191_v21 = vadd.f32 %v190_v18, %v189_v16  ;;  %v1187_v22 = vpop.f32.mrf.mxu0 }
 0x11f   :  { %v185_v23 = vadd.f32 %v184_v20, %v183_v17  ;;  %v192_v24 = vrot.slane %v191_v21, 2 }
 0x121   :  { %v186_v25 = vrot.slane %v185_v23, 1  ;;  %v193_v26 = vadd.f32 %v192_v24, %v191_v21 }
 0x123   :  { %v194_v27 = vrot.slane %v193_v26, 1  ;;  %v187_v28 = vadd.f32 %v186_v25, %v185_v23 }
 0x125   :  { %v195_v29 = vadd.f32 %v194_v27, %v193_v26 }
 0x127   :  { %v197_v30 = vsel %vm196_vm2, %v187_v28, %v195_v29  ;;  %v1316_v29 = vld [vmem:[#allocation6 + $0xb8] sm:$0xff]  }
 0x128   :  { %198 = vrot.lane.b32.xlu0 %v197_v30, %s1461_s18  ;;  %1209 = vmatpush3.bf16.msra.mxu0 %v1316_v29  ;;  %v1329_v29 = vld [vmem:[#allocation6 + $0xd0] sm:$0xff]  }
 0x129   :  { %1210 = vmatprep.subr.bf16.mxu0 %v1468_v1 }
 0x19a   :  { %v199_v31 = vpop.permute.xlu0 %198 }
 0x19b   :  { %v200_v32 = vadd.f32 %v199_v31, %v197_v30  ;;  %v1317_v30 = vld [vmem:[#allocation6 + $0xb0] sm:$0xff]   ;;  %v1318_v31 = vld [vmem:[#allocation6 + $0xa8] sm:$0xff]  }
 0x19c   :  { %1211 = vmatpush3.bf16.msra.mxu0 %v1317_v30  ;;  %v1330_v30 = vld [vmem:[#allocation6 + $0xc8] sm:$0xff]  }
 0x19d   :  { %201 = vrot.lane.b32.xlu0 %v200_v32, %s1470_s2  ;;  %1212 = vmatprep.subr.bf16.mxu0 %v1468_v1 }
 0x1a0   :  { %1213 = vmatpush3.bf16.msra.mxu0 %v1318_v31  ;;  %v1331_v31 = vld [vmem:[#allocation6 + $0xc0] sm:$0xff]  }
 0x1a1   :  { %1214 = vmatprep.subr.bf16.mxu0 %v1468_v1 }
 0x20f   :  { %v202_v41 = vpop.permute.xlu0 %201 }
 0x210   :  { %v203_v42 = vadd.f32 %v202_v41, %v200_v32  ;;  %v1319_v32 = vld [vmem:[#allocation6 + $0xa0] sm:$0xff]  }
 0x211   :  { %1215 = vmatpush3.bf16.msra.mxu0 %v1319_v32 }
 0x212   :  { %v204_v43 = vmul.f32 0.125, %v203_v42  ;;  %1216 = vmatprep.subr.bf16.mxu0 %v1468_v1 }
 0x214   :  { %v205_v44 = vmul.f32 %v204_v43, %v204_v43 }
 0x215   :  { %1217 = vmatpush3.bf16.msra.mxu0 %v1320_v33 }
 0x216   :  { %v207_v45 = vrot.slane %v205_v44, 7  ;;  %1218 = vmatprep.subr.bf16.mxu0 %v1468_v1 }
 0x218   :  { %v209_v46 = vsub.f32 %v204_v43, %v207_v45 }
 0x219   :  { %1219 = vmatpush3.bf16.msra.mxu0 %v1321_v34 }
 0x21a   :  { %v210_v47 = vmax.f32 %v209_v46, 0.0  ;;  %1220 = vmatprep.subr.bf16.mxu0 %v1468_v1  ;;  %v251_v46 = vld [vmem:[#allocation8 + $0x2] sm:$0x1] }
 0x21c   :  { %v211_v48 = vadd.f32 1e-05, %v210_v47 }
 0x21d   :  { %1221 = vmatpush3.bf16.msra.mxu0 %v1322_v35 }
 0x21e   :  { %1348 = vrsqrt.f32 %v211_v48  ;;  %1222 = vmatprep.subr.bf16.mxu0 %v1468_v1 }
 0x221   :  { %1223 = vmatpush3.bf16.msra.mxu0 %v1323_v36 }
 0x222   :  { %1248 = vmatprep.subr.bf16.mxu0 %v1468_v1 }
 0x22b   :  { %v1349_v51 = vpop.eup %1348 }
 0x22c   :  { %v214_v54 = vrot.slane %v1349_v51, 1 }
 0x22e   :  { %v216_v55 = vmul.f32 %v214_v54, %v88_v52 }
 0x230   :  { %v217_v57 = vmul.f32 %v216_v55, %v204_v43  ;;  %v222_v58 = vrot.slane %v216_v55, %v1549_v53 }
 0x232   :  { %v218_v59 = vsub.f32 %v89_v56, %v217_v57  ;;  %v223_v61 = vmul.f32 %v222_v58, %v1531_v11  ;;  %v392_v57 = vstv %s1069_s11 }
 0x234   :  { %v227_v60 = vrot.slane %v218_v59, %v1549_v53 }
 0x236   :  { %v228_v62 = vadd.f32 %v227_v60, %v223_v61 }
 0x238   :  { %v230_v0 = vmin.f32 %v228_v62, 0.0  ;;  %v229_v2 = vmax.f32 %v228_v62, 0.0 }
 0x23a   :  { %v232_v3 = vmul.f32 %v231_v63, %v230_v0 }
 0x23c   :  { %v233_v4 = vadd.f32 %v232_v3, %v229_v2 }
 0x23e   :  { %v254_v5 = vpack.c.bf16 %v233_v4, %v233_v4 }
 0x240   :  { %1205 = vmatmul.mubr.bf16.vlgmr.msra.gmra.mxu1 %v254_v5 }
 0x241   :  { %1244 = vmatprep.mubr.msk.bf16.mxu1 %vm1469_vm0, %v1468_v1 }
 0x300   :  { %v1556_v6 = vpop.f32.mrf.mxu1 }
 0x301   :  { %v343_v7 = vsel %vm180_vm1, %v1556_v6, 0.0  ;;  %v350_v8 = vmul.f32 %v1556_v6, %v1556_v6 }
 0x302   :  { %v344_v10 = vrot.slane %v343_v7, 4  ;;  %v1206_v11 = vpop.f32.mrf.mxu1 }
 0x303   :  { %v351_v12 = vsel %vm180_vm1, %v350_v8, 0.0 }
 0x304   :  { %v345_v13 = vadd.f32 %v344_v10, %v343_v7  ;;  %v352_v14 = vrot.slane %v351_v12, 4  ;;  %v340_v15 = vpop.f32.mrf.mxu1 }
 0x306   :  { %v346_v16 = vrot.slane %v345_v13, 2  ;;  %v353_v17 = vadd.f32 %v352_v14, %v351_v12  ;;  %v1207_v18 = vpop.f32.mrf.mxu1 }
 0x308   :  { %v347_v19 = vadd.f32 %v346_v16, %v345_v13  ;;  %v354_v20 = vrot.slane %v353_v17, 2 }
 0x30a   :  { %v348_v21 = vrot.slane %v347_v19, 1  ;;  %v355_v22 = vadd.f32 %v354_v20, %v353_v17 }
 0x30c   :  { %v356_v23 = vrot.slane %v355_v22, 1  ;;  %v349_v24 = vadd.f32 %v348_v21, %v347_v19 }
 0x30e   :  { %v357_v25 = vadd.f32 %v356_v23, %v355_v22 }
 0x310   :  { %v358_v26 = vsel %vm196_vm2, %v349_v24, %v357_v25  ;;  %v1324_v24 = vld [vmem:[#allocation6 + $0xf8] sm:$0xff]   ;;  %v1325_v25 = vld [vmem:[#allocation6 + $0xf0] sm:$0xff]  }
 0x311   :  { %359 = vrot.lane.b32.xlu1 %v358_v26, %s1461_s18  ;;  %1229 = vmatpush3.bf16.msra.mxu1 %v1324_v24  ;;  %v1337_v24 = vld [vmem:[#allocation6 + $0x110] sm:$0xff]  }
 0x312   :  { %1230 = vmatprep.subr.bf16.mxu1 %v1468_v1 }
 0x315   :  { %1231 = vmatpush3.bf16.msra.mxu1 %v1325_v25  ;;  %v1338_v25 = vld [vmem:[#allocation6 + $0x108] sm:$0xff]  }
 0x316   :  { %1232 = vmatprep.subr.bf16.mxu1 %v1468_v1 }
 0x383   :  { %v360_v27 = vpop.permute.xlu1 %359 }
 0x384   :  { %v361_v28 = vadd.f32 %v360_v27, %v358_v26  ;;  %v1326_v26 = vld [vmem:[#allocation6 + $0xe8] sm:$0xff]   ;;  %v1327_v27 = vld [vmem:[#allocation6 + $0xe0] sm:$0xff]  }
 0x385   :  { %1233 = vmatpush3.bf16.msra.mxu1 %v1326_v26  ;;  %v1339_v26 = vld [vmem:[#allocation6 + $0x100] sm:$0xff]  }
 0x386   :  { %362 = vrot.lane.b32.xlu1 %v361_v28, %s1470_s2  ;;  %1234 = vmatprep.subr.bf16.mxu1 %v1468_v1 }
 0x389   :  { %1235 = vmatpush3.bf16.msra.mxu1 %v1327_v27 }
 0x38a   :  { %1236 = vmatprep.subr.bf16.mxu1 %v1468_v1 }
 0x3f8   :  { %v363_v37 = vpop.permute.xlu1 %362 }
 0x3f9   :  { %v364_v38 = vadd.f32 %v363_v37, %v361_v28  ;;  %v1328_v28 = vld [vmem:[#allocation6 + $0xd8] sm:$0xff]  }
 0x3fa   :  { %1237 = vmatpush3.bf16.msra.mxu1 %v1328_v28 }
 0x3fb   :  { %v365_v39 = vmul.f32 0.125, %v364_v38  ;;  %1238 = vmatprep.subr.bf16.mxu1 %v1468_v1 }
 0x3fd   :  { %v366_v40 = vmul.f32 %v365_v39, %v365_v39 }
 0x3fe   :  { %1239 = vmatpush3.bf16.msra.mxu1 %v1329_v29 }
 0x3ff   :  { %v368_v41 = vrot.slane %v366_v40, 7  ;;  %1240 = vmatprep.subr.bf16.mxu1 %v1468_v1 }
 0x401   :  { %v370_v42 = vsub.f32 %v365_v39, %v368_v41  ;;  %v413_v41 = vld [vmem:[#allocation8 + $0x4] sm:$0x1] }
 0x402   :  { %1241 = vmatpush3.bf16.msra.mxu1 %v1330_v30 }
 0x403   :  { %v371_v43 = vmax.f32 %v370_v42, 0.0  ;;  %1242 = vmatprep.subr.bf16.mxu1 %v1468_v1 }
 0x405   :  { %v372_v44 = vadd.f32 1e-05, %v371_v43 }
 0x406   :  { %1243 = vmatpush3.bf16.msra.mxu1 %v1331_v31 }
 0x407   :  { %1350 = vrsqrt.f32 %v372_v44  ;;  %1268 = vmatprep.subr.bf16.mxu1 %v1468_v1  ;;  %v414_v44 = vld [vmem:[#allocation8 + $0x5] sm:$0x1] }
 0x414   :  { %v1351_v45 = vpop.eup %1350 }
 0x415   :  { %v375_v47 = vrot.slane %v1351_v45, 1 }
 0x417   :  { %v377_v48 = vmul.f32 %v375_v47, %v251_v46 }
 0x419   :  { %v378_v50 = vmul.f32 %v377_v48, %v365_v39  ;;  %v383_v51 = vrot.slane %v377_v48, %v1549_v53 }
 0x41b   :  { %v379_v52 = vsub.f32 %v252_v49, %v378_v50  ;;  %v384_v54 = vmul.f32 %v383_v51, %v1556_v6  ;;  %v554_v51 = vstv %s1078_s12 }
 0x41d   :  { %v388_v55 = vrot.slane %v379_v52, %v1549_v53 }
 0x41f   :  { %v389_v56 = vadd.f32 %v388_v55, %v384_v54 }
 0x421   :  { %v391_v58 = vmin.f32 %v389_v56, 0.0  ;;  %v390_v59 = vmax.f32 %v389_v56, 0.0 }
 0x423   :  { %v393_v60 = vmul.f32 %v392_v57, %v391_v58 }
 0x425   :  { %v394_v61 = vadd.f32 %v393_v60, %v390_v59 }
 0x427   :  { %v1578_v62 = vadd.f32 %v394_v61, %v1523_v9 }
 0x429   :  { %v416_v63 = vpack.c.bf16 %v1578_v62, %v1578_v62 }
 0x42b   :  { %1225 = vmatmul.mubr.bf16.vlgmr.msra.gmra.mxu0 %v416_v63 }
 0x42c   :  { %1264 = vmatprep.mubr.msk.bf16.mxu0 %vm1469_vm0, %v1468_v1 }
 0x4eb   :  { %v1584_v0 = vpop.f32.mrf.mxu0 }
 0x4ec   :  { %v505_v2 = vsel %vm180_vm1, %v1584_v0, 0.0  ;;  %v512_v3 = vmul.f32 %v1584_v0, %v1584_v0 }
 0x4ed   :  { %v506_v4 = vrot.slane %v505_v2, 4  ;;  %v1226_v5 = vpop.f32.mrf.mxu0 }
 0x4ee   :  { %v513_v6 = vsel %vm180_vm1, %v512_v3, 0.0 }
 0x4ef   :  { %v507_v7 = vadd.f32 %v506_v4, %v505_v2  ;;  %v514_v8 = vrot.slane %v513_v6, 4  ;;  %v502_v10 = vpop.f32.mrf.mxu0 }
 0x4f1   :  { %v508_v11 = vrot.slane %v507_v7, 2  ;;  %v515_v12 = vadd.f32 %v514_v8, %v513_v6  ;;  %v1227_v13 = vpop.f32.mrf.mxu0 }
 0x4f3   :  { %v509_v14 = vadd.f32 %v508_v11, %v507_v7  ;;  %v516_v15 = vrot.slane %v515_v12, 2 }
 0x4f5   :  { %v510_v16 = vrot.slane %v509_v14, 1  ;;  %v517_v17 = vadd.f32 %v516_v15, %v515_v12 }
 0x4f7   :  { %v518_v18 = vrot.slane %v517_v17, 1  ;;  %v511_v19 = vadd.f32 %v510_v16, %v509_v14 }
 0x4f9   :  { %v519_v20 = vadd.f32 %v518_v18, %v517_v17 }
 0x4fb   :  { %v520_v21 = vsel %vm196_vm2, %v511_v19, %v519_v20  ;;  %v1332_v19 = vld [vmem:[#allocation6 + $0x138] sm:$0xff]   ;;  %v1333_v20 = vld [vmem:[#allocation6 + $0x130] sm:$0xff]  }
 0x4fc   :  { %521 = vrot.lane.b32.xlu0 %v520_v21, %s1461_s18  ;;  %1249 = vmatpush3.bf16.msra.mxu0 %v1332_v19  ;;  %v1345_v19 = vld [vmem:[#allocation6 + $0x150] sm:$0xff]  }
 0x4fd   :  { %1250 = vmatprep.subr.bf16.mxu0 %v1468_v1 }
 0x500   :  { %1251 = vmatpush3.bf16.msra.mxu0 %v1333_v20  ;;  %v1346_v20 = vld [vmem:[#allocation6 + $0x148] sm:$0xff]  }
 0x501   :  { %1252 = vmatprep.subr.bf16.mxu0 %v1468_v1 }
 0x56e   :  { %v522_v22 = vpop.permute.xlu0 %521 }
 0x56f   :  { %v523_v23 = vadd.f32 %v522_v22, %v520_v21  ;;  %v1334_v21 = vld [vmem:[#allocation6 + $0x128] sm:$0xff]   ;;  %v1335_v22 = vld [vmem:[#allocation6 + $0x120] sm:$0xff]  }
 0x570   :  { %1253 = vmatpush3.bf16.msra.mxu0 %v1334_v21  ;;  %v1347_v21 = vld [vmem:[#allocation6 + $0x140] sm:$0xff]  }
 0x571   :  { %524 = vrot.lane.b32.xlu1 %v523_v23, %s1470_s2  ;;  %1254 = vmatprep.subr.bf16.mxu0 %v1468_v1 }
 0x574   :  { %1255 = vmatpush3.bf16.msra.mxu0 %v1335_v22 }
 0x575   :  { %1256 = vmatprep.subr.bf16.mxu0 %v1468_v1 }
 0x5e3   :  { %v525_v32 = vpop.permute.xlu1 %524 }
 0x5e4   :  { %v526_v33 = vadd.f32 %v525_v32, %v523_v23  ;;  %v1336_v23 = vld [vmem:[#allocation6 + $0x118] sm:$0xff]  }
 0x5e5   :  { %1257 = vmatpush3.bf16.msra.mxu0 %v1336_v23 }
 0x5e6   :  { %v527_v34 = vmul.f32 0.125, %v526_v33  ;;  %1258 = vmatprep.subr.bf16.mxu0 %v1468_v1 }
 0x5e8   :  { %v528_v35 = vmul.f32 %v527_v34, %v527_v34 }
 0x5e9   :  { %1259 = vmatpush3.bf16.msra.mxu0 %v1337_v24 }
 0x5ea   :  { %v530_v36 = vrot.slane %v528_v35, 7  ;;  %1260 = vmatprep.subr.bf16.mxu0 %v1468_v1 }
 0x5ec   :  { %v532_v37 = vsub.f32 %v527_v34, %v530_v36  ;;  %v574_v36 = vld [vmem:[#allocation8 + $0x6] sm:$0x1] }
 0x5ed   :  { %1261 = vmatpush3.bf16.msra.mxu0 %v1338_v25 }
 0x5ee   :  { %v533_v38 = vmax.f32 %v532_v37, 0.0  ;;  %1262 = vmatprep.subr.bf16.mxu0 %v1468_v1 }
 0x5f0   :  { %v534_v39 = vadd.f32 1e-05, %v533_v38 }
 0x5f1   :  { %1263 = vmatpush3.bf16.msra.mxu0 %v1339_v26 }
 0x5f2   :  { %1352 = vrsqrt.f32 %v534_v39  ;;  %v575_v39 = vld [vmem:[#allocation8 + $0x7] sm:$0x1] }
 0x5ff   :  { %v1353_v40 = vpop.eup %1352 }
 0x600   :  { %v537_v42 = vrot.slane %v1353_v40, 1 }
 0x602   :  { %v539_v43 = vmul.f32 %v537_v42, %v413_v41 }
 0x604   :  { %v540_v45 = vmul.f32 %v539_v43, %v527_v34  ;;  %v545_v46 = vrot.slane %v539_v43, %v1549_v53 }
 0x606   :  { %v541_v47 = vsub.f32 %v414_v44, %v540_v45  ;;  %v546_v48 = vmul.f32 %v545_v46, %v1584_v0  ;;  %v715_v46 = vstv %s1087_s13 }
 0x608   :  { %v550_v49 = vrot.slane %v541_v47, %v1549_v53 }
 0x60a   :  { %v551_v50 = vadd.f32 %v550_v49, %v546_v48 }
 0x60c   :  { %v553_v52 = vmin.f32 %v551_v50, 0.0  ;;  %v552_v54 = vmax.f32 %v551_v50, 0.0 }
 0x60e   :  { %v555_v55 = vmul.f32 %v554_v51, %v553_v52 }
 0x610   :  { %v556_v56 = vadd.f32 %v555_v55, %v552_v54 }
 0x612   :  { %v577_v57 = vpack.c.bf16 %v556_v56, %v556_v56 }
 0x614   :  { %1245 = vmatmul.mubr.bf16.vlgmr.msra.gmra.mxu1 %v577_v57 }
 0x615   :  { %1284 = vmatprep.mubr.msk.bf16.mxu1 %vm1469_vm0, %v1468_v1 }
 0x6d4   :  { %v1607_v58 = vpop.f32.mrf.mxu1 }
 0x6d5   :  { %v666_v59 = vsel %vm180_vm1, %v1607_v58, 0.0  ;;  %v673_v60 = vmul.f32 %v1607_v58, %v1607_v58 }
 0x6d6   :  { %v667_v61 = vrot.slane %v666_v59, 4  ;;  %v1246_v63 = vpop.f32.mrf.mxu1 }
 0x6d7   :  { %v674_v0 = vsel %vm180_vm1, %v673_v60, 0.0 }
 0x6d8   :  { %v668_v2 = vadd.f32 %v667_v61, %v666_v59  ;;  %v675_v3 = vrot.slane %v674_v0, 4  ;;  %v663_v4 = vpop.f32.mrf.mxu1 }
 0x6da   :  { %v669_v5 = vrot.slane %v668_v2, 2  ;;  %v676_v6 = vadd.f32 %v675_v3, %v674_v0  ;;  %v1247_v7 = vpop.f32.mrf.mxu1 }
 0x6dc   :  { %v670_v8 = vadd.f32 %v669_v5, %v668_v2  ;;  %v677_v10 = vrot.slane %v676_v6, 2 }
 0x6de   :  { %v671_v11 = vrot.slane %v670_v8, 1  ;;  %v678_v12 = vadd.f32 %v677_v10, %v676_v6 }
 0x6e0   :  { %v679_v13 = vrot.slane %v678_v12, 1  ;;  %v672_v14 = vadd.f32 %v671_v11, %v670_v8 }
 0x6e2   :  { %v680_v15 = vadd.f32 %v679_v13, %v678_v12 }
 0x6e4   :  { %v681_v16 = vsel %vm196_vm2, %v672_v14, %v680_v15  ;;  %v1340_v14 = vld [vmem:[#allocation6 + $0x178] sm:$0xff]   ;;  %v1341_v15 = vld [vmem:[#allocation6 + $0x170] sm:$0xff]  }
 0x6e5   :  { %682 = vrot.lane.b32.xlu0 %v681_v16, %s1461_s18  ;;  %1269 = vmatpush3.bf16.msra.mxu1 %v1340_v14 }
 0x6e6   :  { %1270 = vmatprep.subr.bf16.mxu1 %v1468_v1 }
 0x6e9   :  { %1271 = vmatpush3.bf16.msra.mxu1 %v1341_v15 }
 0x6ea   :  { %1272 = vmatprep.subr.bf16.mxu1 %v1468_v1 }
 0x757   :  { %v683_v17 = vpop.permute.xlu0 %682 }
 0x758   :  { %v684_v18 = vadd.f32 %v683_v17, %v681_v16  ;;  %v1342_v16 = vld [vmem:[#allocation6 + $0x168] sm:$0xff]   ;;  %v1343_v17 = vld [vmem:[#allocation6 + $0x160] sm:$0xff]  }
 0x759   :  { %1273 = vmatpush3.bf16.msra.mxu1 %v1342_v16 }
 0x75a   :  { %685 = vrot.lane.b32.xlu1 %v684_v18, %s1470_s2  ;;  %1274 = vmatprep.subr.bf16.mxu1 %v1468_v1 }
 0x75d   :  { %1275 = vmatpush3.bf16.msra.mxu1 %v1343_v17  ;;  %v897_v17 = vld [vmem:[#allocation8 + $0xa] sm:$0x1] }
 0x75e   :  { %1276 = vmatprep.subr.bf16.mxu1 %v1468_v1 }
 0x7cc   :  { %v686_v27 = vpop.permute.xlu1 %685 }
 0x7cd   :  { %v687_v28 = vadd.f32 %v686_v27, %v684_v18  ;;  %v1344_v18 = vld [vmem:[#allocation6 + $0x158] sm:$0xff]  }
 0x7ce   :  { %1277 = vmatpush3.bf16.msra.mxu1 %v1344_v18 }
 0x7cf   :  { %v688_v29 = vmul.f32 0.125, %v687_v28  ;;  %1278 = vmatprep.subr.bf16.mxu1 %v1468_v1 }
 0x7d1   :  { %v689_v30 = vmul.f32 %v688_v29, %v688_v29 }
 0x7d2   :  { %1279 = vmatpush3.bf16.msra.mxu1 %v1345_v19 }
 0x7d3   :  { %v691_v31 = vrot.slane %v689_v30, 7  ;;  %1280 = vmatprep.subr.bf16.mxu1 %v1468_v1 }
 0x7d5   :  { %v693_v32 = vsub.f32 %v688_v29, %v691_v31  ;;  %v736_v31 = vld [vmem:[#allocation8 + $0x8] sm:$0x1] }
 0x7d6   :  { %1281 = vmatpush3.bf16.msra.mxu1 %v1346_v20  ;;  %v898_v20 = vld [vmem:[#allocation8 + $0xb] sm:$0x1] }
 0x7d7   :  { %v694_v33 = vmax.f32 %v693_v32, 0.0  ;;  %1282 = vmatprep.subr.bf16.mxu1 %v1468_v1 }
 0x7d9   :  { %v695_v34 = vadd.f32 1e-05, %v694_v33 }
 0x7da   :  { %1283 = vmatpush3.bf16.msra.mxu1 %v1347_v21 }
 0x7db   :  { %1354 = vrsqrt.f32 %v695_v34  ;;  %v737_v34 = vld [vmem:[#allocation8 + $0x9] sm:$0x1] }
 0x7e8   :  { %v1355_v35 = vpop.eup %1354 }
 0x7e9   :  { %v698_v37 = vrot.slane %v1355_v35, 1 }
 0x7eb   :  { %v700_v38 = vmul.f32 %v698_v37, %v574_v36 }
 0x7ed   :  { %v701_v40 = vmul.f32 %v700_v38, %v688_v29  ;;  %v706_v41 = vrot.slane %v700_v38, %v1549_v53 }
 0x7ef   :  { %v702_v42 = vsub.f32 %v575_v39, %v701_v40  ;;  %v707_v43 = vmul.f32 %v706_v41, %v1607_v58  ;;  %v877_v40 = vstv %s1096_s14 }
 0x7f1   :  { %v711_v44 = vrot.slane %v702_v42, %v1549_v53 }
 0x7f3   :  { %v712_v45 = vadd.f32 %v711_v44, %v707_v43 }
 0x7f5   :  { %v714_v47 = vmin.f32 %v712_v45, 0.0  ;;  %v713_v48 = vmax.f32 %v712_v45, 0.0 }
 0x7f7   :  { %v716_v49 = vmul.f32 %v715_v46, %v714_v47 }
 0x7f9   :  { %v717_v50 = vadd.f32 %v716_v49, %v713_v48 }
 0x7fb   :  { %v1628_v51 = vadd.f32 %v717_v50, %v1578_v62 }
 0x7fd   :  { %v739_v52 = vpack.c.bf16 %v1628_v51, %v1628_v51 }
 0x7ff   :  { %1265 = vmatmul.mubr.bf16.vlgmr.msra.gmra.mxu0 %v739_v52 }
 0x8bf   :  { %v1632_v54 = vpop.f32.mrf.mxu0 }
 0x8c0   :  { %v828_v55 = vsel %vm180_vm1, %v1632_v54, 0.0  ;;  %v835_v56 = vmul.f32 %v1632_v54, %v1632_v54 }
 0x8c1   :  { %v829_v57 = vrot.slane %v828_v55, 4  ;;  %v1266_v58 = vpop.f32.mrf.mxu0 }
 0x8c2   :  { %v836_v59 = vsel %vm180_vm1, %v835_v56, 0.0 }
 0x8c3   :  { %v830_v60 = vadd.f32 %v829_v57, %v828_v55  ;;  %v837_v61 = vrot.slane %v836_v59, 4  ;;  %v825_v62 = vpop.f32.mrf.mxu0 }
 0x8c5   :  { %v831_v63 = vrot.slane %v830_v60, 2  ;;  %v838_v0 = vadd.f32 %v837_v61, %v836_v59  ;;  %v1267_v2 = vpop.f32.mrf.mxu0 }
 0x8c7   :  { %v832_v3 = vadd.f32 %v831_v63, %v830_v60  ;;  %v839_v4 = vrot.slane %v838_v0, 2 }
 0x8c9   :  { %v833_v5 = vrot.slane %v832_v3, 1  ;;  %v840_v6 = vadd.f32 %v839_v4, %v838_v0 }
 0x8cb   :  { %v841_v7 = vrot.slane %v840_v6, 1  ;;  %v834_v8 = vadd.f32 %v833_v5, %v832_v3 }
 0x8cd   :  { %v842_v10 = vadd.f32 %v841_v7, %v840_v6 }
 0x8cf   :  { %v843_v11 = vsel %vm196_vm2, %v834_v8, %v842_v10 }
 0x8d0   :  { %844 = vrot.lane.b32.xlu0 %v843_v11, %s1461_s18 }
 0x942   :  { %v845_v12 = vpop.permute.xlu0 %844 }
 0x943   :  { %v846_v13 = vadd.f32 %v845_v12, %v843_v11 }
 0x945   :  { %847 = vrot.lane.b32.xlu1 %v846_v13, %s1470_s2 }
 0x9b7   :  { %v848_v22 = vpop.permute.xlu1 %847 }
 0x9b8   :  { %v849_v23 = vadd.f32 %v848_v22, %v846_v13 }
 0x9ba   :  { %v850_v24 = vmul.f32 0.125, %v849_v23 }
 0x9bc   :  { %v851_v25 = vmul.f32 %v850_v24, %v850_v24 }
 0x9be   :  { %v853_v26 = vrot.slane %v851_v25, 7 }
 0x9c0   :  { %v855_v27 = vsub.f32 %v850_v24, %v853_v26 }
 0x9c2   :  { %v856_v28 = vmax.f32 %v855_v27, 0.0  ;;  %v1038_v27 = vstv %s1105_s15 }
 0x9c4   :  { %v857_v29 = vadd.f32 1e-05, %v856_v28 }
 0x9c6   :  { %1356 = vrsqrt.f32 %v857_v29 }
 0x9d3   :  { %v1357_v30 = vpop.eup %1356 }
 0x9d4   :  { %v860_v32 = vrot.slane %v1357_v30, 1 }
 0x9d6   :  { %v862_v33 = vmul.f32 %v860_v32, %v736_v31 }
 0x9d8   :  { %v863_v35 = vmul.f32 %v862_v33, %v850_v24  ;;  %v868_v36 = vrot.slane %v862_v33, %v1549_v53 }
 0x9da   :  { %v864_v1 = vsub.f32 %v737_v34, %v863_v35  ;;  %v869_v37 = vmul.f32 %v868_v36, %v1632_v54 }
 0x9dc   :  { %v873_v38 = vrot.slane %v864_v1, %v1549_v53 }
 0x9de   :  { %v874_v39 = vadd.f32 %v873_v38, %v869_v37 }
 0x9e0   :  { %v876_v41 = vmin.f32 %v874_v39, 0.0  ;;  %v875_v42 = vmax.f32 %v874_v39, 0.0 }
 0x9e2   :  { %v878_v43 = vmul.f32 %v877_v40, %v876_v41 }
 0x9e4   :  { %v879_v44 = vadd.f32 %v878_v43, %v875_v42 }
 0x9e6   :  { %v900_v45 = vpack.c.bf16 %v879_v44, %v879_v44 }
 0x9e8   :  { %1285 = vmatmul.mubr.bf16.vlgmr.msra.gmra.mxu1 %v900_v45 }
 0xaa8   :  { %v983_v46 = vpop.f32.mrf.mxu1 }
 0xaa9   :  { %v989_v47 = vsel %vm180_vm1, %v983_v46, 0.0  ;;  %v996_v48 = vmul.f32 %v983_v46, %v983_v46 }
 0xaaa   :  { %v990_v49 = vrot.slane %v989_v47, 4  ;;  %v1286_v50 = vpop.f32.mrf.mxu1 }
 0xaab   :  { %v997_v52 = vsel %vm180_vm1, %v996_v48, 0.0 }
 0xaac   :  { %v991_v55 = vadd.f32 %v990_v49, %v989_v47  ;;  %v998_v54 = vrot.slane %v997_v52, 4  ;;  %v986_v56 = vpop.f32.mrf.mxu1 }
 0xaae   :  { %v992_v57 = vrot.slane %v991_v55, 2  ;;  %v999_v58 = vadd.f32 %v998_v54, %v997_v52  ;;  %v1287_v59 = vpop.f32.mrf.mxu1 }
 0xab0   :  { %v993_v60 = vadd.f32 %v992_v57, %v991_v55  ;;  %v1000_v61 = vrot.slane %v999_v58, 2 }
 0xab2   :  { %v994_v62 = vrot.slane %v993_v60, 1  ;;  %v1001_v63 = vadd.f32 %v1000_v61, %v999_v58 }
 0xab4   :  { %v1002_v0 = vrot.slane %v1001_v63, 1  ;;  %v995_v2 = vadd.f32 %v994_v62, %v993_v60 }
 0xab6   :  { %v1003_v3 = vadd.f32 %v1002_v0, %v1001_v63 }
 0xab8   :  { %v1004_v4 = vsel %vm196_vm2, %v995_v2, %v1003_v3 }
 0xab9   :  { %1005 = vrot.lane.b32.xlu0 %v1004_v4, %s1461_s18  ;;  %s1432_s18 = scalar_lea.vmem %s1051_s17, 32 }
 0xaba   :  { %p1433_p6 = scmp.ne.s32.totalorder %s1051_s17, %s1432_s18  ;;  %p1438_p8 = scmp.lt.s32.totalorder %s1432_s18, %s1432_s18 }
 0xabc   :  { %p1439_p9 = por %p1438_p8, %p1437_p7 }
 0xabe   :  { %p1440_p10 = pnand %p1439_p9, %p1433_p6 }
 0xb2b   :  { %v1006_v5 = vpop.permute.xlu0 %1005 }
 0xb2c   :  { %v1007_v6 = vadd.f32 %v1006_v5, %v1004_v4 }
 0xb2e   :  { %1008 = vrot.lane.b32.xlu1 %v1007_v6, %s1470_s2 }
 0xba0   :  { %v1009_v7 = vpop.permute.xlu1 %1008 }
 0xba1   :  { %v1010_v8 = vadd.f32 %v1009_v7, %v1007_v6 }
 0xba3   :  { %v1011_v10 = vmul.f32 0.125, %v1010_v8 }
 0xba5   :  { %v1012_v11 = vmul.f32 %v1011_v10, %v1011_v10 }
 0xba7   :  { %v1014_v12 = vrot.slane %v1012_v11, 7 }
 0xba9   :  { %v1016_v13 = vsub.f32 %v1011_v10, %v1014_v12 }
 0xbab   :  { %v1017_v14 = vmax.f32 %v1016_v13, 0.0 }
 0xbad   :  { %v1018_v15 = vadd.f32 1e-05, %v1017_v14 }
 0xbaf   :  { %1358 = vrsqrt.f32 %v1018_v15 }
 0xbbc   :  { %v1359_v16 = vpop.eup %1358 }
 0xbbd   :  { %v1021_v18 = vrot.slane %v1359_v16, 1 }
 0xbbf   :  { %v1023_v19 = vmul.f32 %v1021_v18, %v897_v17 }
 0xbc1   :  { %v1024_v21 = vmul.f32 %v1023_v19, %v1011_v10  ;;  %v1029_v22 = vrot.slane %v1023_v19, %v1549_v53 }
 0xbc3   :  { %v1025_v23 = vsub.f32 %v898_v20, %v1024_v21  ;;  %v1030_v25 = vmul.f32 %v1029_v22, %v983_v46 }
 0xbc5   :  { %v1034_v24 = vrot.slane %v1025_v23, %v1549_v53 }
 0xbc7   :  { %v1035_v26 = vadd.f32 %v1034_v24, %v1030_v25 }
 0xbc9   :  { %v1037_v28 = vmin.f32 %v1035_v26, 0.0  ;;  %v1036_v29 = vmax.f32 %v1035_v26, 0.0 }
 0xbcb   :  { %v1039_v30 = vmul.f32 %v1038_v27, %v1037_v28 }
 0xbcd   :  { %v1040_v31 = vadd.f32 %v1039_v30, %v1036_v29 }
 0xbcf   :  { %v1041_v32 = vadd.f32 %v1040_v31, %v1628_v51 }
 0xbd1   :  { %v1042_v33 = vadd.f32 %v1041_v32, %v1523_v9 }
 0xbd3   :  { %1043 = vst [vmem:[#allocation10] sm:$0x3] %v1042_v33 }
 0xbd4   :  { %1443 = shalt.err (!%p1440_p10)
}
 0xbd5   :  { %1053 = dma.vmem_to_hbm [thread:$0]  %s1051_s17, 32, %s1668_s4, [#allocation4]  }
 0xbd6   :  { %1458 = dma.done.wait [#allocation4], 32  }
 0xbd7   :  { %1459 = vsyncadd [#allocation4], 4294967264 }
 0xbd8   :  { %1057 = vsyncpa [#allocation3], 1 }
 0xbd9   :  { %1058 = vsyncpa [#allocation7], 1 }
 0xbda   :  { %1059 = vsyncpa [#allocation4], 1 }
 0xbdb   :  { %1060 = vsyncpa [#allocation5], 1 }

</bundles_post_ra>
